<compile_context>
chip_gen: v5e
topology: v5e:2x2
jax: 0.10.0
libtpu: 0.0.40
codegen_flags: <defaults>
</compile_context>

<pallas_src>
import functools

import jax
import jax.numpy as jnp
from jax import lax
from jax.experimental import pallas as pl
from jax.experimental.pallas import tpu as pltpu

HIDDEN = 32  # hidden_size in the PyTorch module


def _round_up(x, m):
    return ((x + m - 1) // m) * m


def dqn_kernel(x_ref, w1_ref, w_ref, b_ref, o_ref, *, num_actions):
    """Fused 4-layer MLP; compute is feature-major (batch on the 128-lane axis).

    x_ref  : (TM, obs)          untransposed input tile (straight from HBM)
    w1_ref : (HIDDEN, obs)      layer-1 weight, PyTorch (out, in) orientation
    w_ref  : (3*HIDDEN, HIDDEN) packed [W2; W3; W4-row-padded], (out, in)
    b_ref  : (4*HIDDEN, 1)      packed [b1; b2; b3; b4] column vectors, f32
    o_ref  : (num_actions, TM)  lane-dense output tile
    """
    x = x_ref[...]                      # (TM, obs)
    cdt = x.dtype                       # weight/activation dtype (f32 or bf16)

    # layer1 + relu1: contract the obs dim of both operands (rhs-transposed
    # matmul, same dimension_numbers as flash-attention's q @ k.T) -> the big
    # x tile is never explicitly transposed; result is already feature-major.
    h = lax.dot_general(w1_ref[...], x, (((1,), (1,)), ((), ())),
                        preferred_element_type=jnp.float32)      # (32, TM)
    h = jnp.maximum(h + b_ref[0:HIDDEN, :], 0.0)

    # layer2 + relu2: (32, 32) @ (32, TM), f32 accumulation
    h = jnp.dot(w_ref[0:HIDDEN, :], h.astype(cdt),
                preferred_element_type=jnp.float32)
    h = jnp.maximum(h + b_ref[HIDDEN:2 * HIDDEN, :], 0.0)

    # layer3 + relu3
    h = jnp.dot(w_ref[HIDDEN:2 * HIDDEN, :], h.astype(cdt),
                preferred_element_type=jnp.float32)
    h = jnp.maximum(h + b_ref[2 * HIDDEN:3 * HIDDEN, :], 0.0)

    # output_layer (no activation); rows are padded to HIDDEN, only the real
    # num_actions rows are stored so the lane dim stays dense.
    out = jnp.dot(w_ref[2 * HIDDEN:3 * HIDDEN, :], h.astype(cdt),
                  preferred_element_type=jnp.float32)
    out = out + b_ref[3 * HIDDEN:4 * HIDDEN, :]
    o_ref[...] = out[:num_actions, :].astype(o_ref.dtype)


def pack_dqn_params(params, dtype=jnp.float32):
    """One-time packing (hoisted out of the forward path).

    Returns (w1, w234, bias, num_actions):
      w1   : (HIDDEN, obs)        layer-1 weight, PyTorch (out, in) orientation
      w234 : (3*HIDDEN, HIDDEN)   [W2; W3; W4 zero-padded to 32 rows]
      bias : (4*HIDDEN, 1)        [b1; b2; b3; b4] as f32 column vectors
    """
    w1 = jnp.asarray(params["w1"]).astype(dtype)

    def pad_sq(w):                       # (out<=32, 32) -> (32, 32), zero pad rows
        out_f, in_f = w.shape
        assert out_f <= HIDDEN and in_f == HIDDEN
        return jnp.zeros((HIDDEN, HIDDEN), dtype).at[:out_f, :].set(
            jnp.asarray(w).astype(dtype))

    def pad_b(b):                        # (out,) -> (32, 1), kept f32
        return jnp.zeros((HIDDEN, 1), jnp.float32).at[:b.shape[0], 0].set(
            jnp.asarray(b).astype(jnp.float32))

    w234 = jnp.concatenate(
        [pad_sq(params["w2"]), pad_sq(params["w3"]), pad_sq(params["w4"])], 0)
    bias = jnp.concatenate([pad_b(params[f"b{i}"]) for i in range(1, 5)], 0)
    num_actions = params["w4"].shape[0]
    return w1, w234, bias, num_actions


def dqn_forward(x, w1, w234, bias, *, num_actions, tile_m=4096):
    """x: (B, observation_size).  Returns (B, num_actions) f32, identical
    semantics to DQN.forward.  w1/w234/bias come from pack_dqn_params."""
    B, obs = x.shape
    assert w1.shape == (HIDDEN, obs)
    assert num_actions <= HIDDEN

    x = x.astype(w1.dtype)   # no-op in the default f32 path

    # Batch tile: 128-aligned (lane width), as large as tile_m allows, but
    # capped at ~half the (128-rounded) batch so the grid has >= 2 balanced
    # steps and megacore sharding can engage on v7x.  Ragged tail handled by
    # Pallas boundary blocks (no wrapper padding pass).
    b_ceil = _round_up(B, 128)
    half = _round_up(pl.cdiv(b_ceil, 2), 128)
    tm = max(128, min(tile_m, half))
    grid = (pl.cdiv(B, tm),)

    out_t = pl.pallas_call(
        functools.partial(dqn_kernel, num_actions=num_actions),
        out_shape=jax.ShapeDtypeStruct((num_actions, B), jnp.float32),
        grid=grid,
        in_specs=[
            # batch tile of x: double-buffered across grid steps
            pl.BlockSpec((tm, obs), lambda i: (i, 0)),
            # weights / biases: constant block index -> DMA'd once, stay
            # resident in VMEM for the whole grid
            pl.BlockSpec((HIDDEN, obs), lambda i: (0, 0)),
            pl.BlockSpec((3 * HIDDEN, HIDDEN), lambda i: (0, 0)),
            pl.BlockSpec((4 * HIDDEN, 1), lambda i: (0, 0)),
        ],
        out_specs=pl.BlockSpec((num_actions, tm), lambda i: (0, i)),
        compiler_params=pltpu.CompilerParams(
            # batch axis is embarrassingly parallel -> megacore sharding on v7x
            dimension_semantics=("parallel",)),
    )(x, w1, w234, bias)

    # (num_actions, B) -> PyTorch's (B, num_actions); tiny (B*num_actions elems).
    return out_t.T


def init_dqn_params(key, observation_size, num_actions, hidden_size=32):
    """PyTorch nn.Linear-style init, weights in (out_features, in_features)."""
    assert hidden_size == HIDDEN
    dims = [(hidden_size, observation_size),
            (hidden_size, hidden_size),
            (hidden_size, hidden_size),
            (num_actions, hidden_size)]
    params = {}
    for i, (fan_out, fan_in) in enumerate(dims, start=1):
        key, kw, kb = jax.random.split(key, 3)
        bound = 1.0 / jnp.sqrt(jnp.float32(fan_in))
        params[f"w{i}"] = jax.random.uniform(
            kw, (fan_out, fan_in), jnp.float32, -bound, bound)
        params[f"b{i}"] = jax.random.uniform(
            kb, (fan_out,), jnp.float32, -bound, bound)
    return params


def dqn_reference(x, params):
    """Pure-JAX reference (PyTorch orientation: y = x @ W.T + b)."""
    h = jnp.maximum(x @ params["w1"].T + params["b1"], 0.0)
    h = jnp.maximum(h @ params["w2"].T + params["b2"], 0.0)
    h = jnp.maximum(h @ params["w3"].T + params["b3"], 0.0)
    return h @ params["w4"].T + params["b4"]


if __name__ == "__main__":
    observation_size = 16
    num_actions = 4
    batch = 8

    key = jax.random.PRNGKey(0)
    key, kx = jax.random.split(key)
    params = init_dqn_params(key, observation_size, num_actions, hidden_size=32)
    x = jax.random.normal(kx, (batch, observation_size), jnp.float32)

    # Pack once (hoisted out of the per-call path), close over the slabs, jit.
    w1, w234, bias, na = pack_dqn_params(params)
    fwd = jax.jit(functools.partial(
        dqn_forward, w1=w1, w234=w234, bias=bias, num_actions=na))

    out = jax.block_until_ready(fwd(x))

    ref = dqn_reference(x, params)
    assert out.shape == (batch, num_actions), out.shape
    assert jnp.allclose(out, ref, atol=1e-5, rtol=1e-5), "mismatch vs reference"

    print("KERNEL_OK")
</pallas_src>

<mosaic_0001>
module attributes {stable_mosaic.version = 11 : i64} {
  func.func @dqn_kernel(%arg0: i32, %arg1: memref<128x16xf32, #tpu.memory_space<vmem>>, %arg2: memref<32x16xf32, #tpu.memory_space<vmem>>, %arg3: memref<96x32xf32, #tpu.memory_space<vmem>>, %arg4: memref<128x1xf32, #tpu.memory_space<vmem>>, %arg5: memref<4x128xf32, #tpu.memory_space<vmem>>) attributes {dimension_semantics = [#tpu.dimension_semantics<parallel>], iteration_bounds = array<i64: 1>, scalar_prefetch = 0 : i64, scratch_operands = 0 : i64, tpu.core_type = #tpu.core_type<tc>, window_params = [{transform_indices = @transform_0, window_bounds = array<i64: 128, 16>}, {pipeline_mode = #tpu.pipeline_mode<synchronous>, transform_indices = @transform_1, window_bounds = array<i64: 32, 16>}, {pipeline_mode = #tpu.pipeline_mode<synchronous>, transform_indices = @transform_2, window_bounds = array<i64: 96, 32>}, {pipeline_mode = #tpu.pipeline_mode<synchronous>, transform_indices = @transform_3, window_bounds = array<i64: 128, 1>}, {transform_indices = @transform_4, window_bounds = array<i64: 4, 128>}]} {
    %c0 = arith.constant 0 : index
    %c0_0 = arith.constant 0 : index
    %0 = vector.load %arg1[%c0, %c0_0] : memref<128x16xf32, #tpu.memory_space<vmem>>, vector<128x16xf32>
    %c0_1 = arith.constant 0 : index
    %c0_2 = arith.constant 0 : index
    %1 = vector.load %arg2[%c0_1, %c0_2] : memref<32x16xf32, #tpu.memory_space<vmem>>, vector<32x16xf32>
    %cst = arith.constant dense<0.000000e+00> : vector<32x128xf32>
    %2 = tpu.matmul %1, %0, %cst {dimension_numbers = #tpu.dot_dimension_numbers<[1], [1], [0], [0], [0, 0, 1, 0], [], []>} : vector<32x16xf32>, vector<128x16xf32>, vector<32x128xf32> -> vector<32x128xf32>
    %c0_3 = arith.constant 0 : index
    %c0_4 = arith.constant 0 : index
    %3 = vector.load %arg4[%c0_3, %c0_4] : memref<128x1xf32, #tpu.memory_space<vmem>>, vector<32x1xf32>
    %4 = vector.broadcast %3 : vector<32x1xf32> to vector<32x128xf32>
    %5 = arith.addf %2, %4 : vector<32x128xf32>
    %cst_5 = arith.constant 0.000000e+00 : f32
    %6 = vector.broadcast %cst_5 : f32 to vector<32x128xf32>
    %7 = arith.maximumf %5, %6 : vector<32x128xf32>
    %c0_6 = arith.constant 0 : index
    %c0_7 = arith.constant 0 : index
    %8 = vector.load %arg3[%c0_6, %c0_7] : memref<96x32xf32, #tpu.memory_space<vmem>>, vector<32x32xf32>
    %cst_8 = arith.constant dense<0.000000e+00> : vector<32x128xf32>
    %9 = tpu.matmul %8, %7, %cst_8 {dimension_numbers = #tpu.dot_dimension_numbers<[1], [0], [0], [1], [0, 0, 1, 1], [], []>} : vector<32x32xf32>, vector<32x128xf32>, vector<32x128xf32> -> vector<32x128xf32>
    %c32 = arith.constant 32 : index
    %c0_9 = arith.constant 0 : index
    %10 = vector.load %arg4[%c32, %c0_9] : memref<128x1xf32, #tpu.memory_space<vmem>>, vector<32x1xf32>
    %11 = vector.broadcast %10 : vector<32x1xf32> to vector<32x128xf32>
    %12 = arith.addf %9, %11 : vector<32x128xf32>
    %cst_10 = arith.constant 0.000000e+00 : f32
    %13 = vector.broadcast %cst_10 : f32 to vector<32x128xf32>
    %14 = arith.maximumf %12, %13 : vector<32x128xf32>
    %c32_11 = arith.constant 32 : index
    %c0_12 = arith.constant 0 : index
    %15 = vector.load %arg3[%c32_11, %c0_12] : memref<96x32xf32, #tpu.memory_space<vmem>>, vector<32x32xf32>
    %cst_13 = arith.constant dense<0.000000e+00> : vector<32x128xf32>
    %16 = tpu.matmul %15, %14, %cst_13 {dimension_numbers = #tpu.dot_dimension_numbers<[1], [0], [0], [1], [0, 0, 1, 1], [], []>} : vector<32x32xf32>, vector<32x128xf32>, vector<32x128xf32> -> vector<32x128xf32>
    %c64 = arith.constant 64 : index
    %c0_14 = arith.constant 0 : index
    %17 = vector.load %arg4[%c64, %c0_14] : memref<128x1xf32, #tpu.memory_space<vmem>>, vector<32x1xf32>
    %18 = vector.broadcast %17 : vector<32x1xf32> to vector<32x128xf32>
    %19 = arith.addf %16, %18 : vector<32x128xf32>
    %cst_15 = arith.constant 0.000000e+00 : f32
    %20 = vector.broadcast %cst_15 : f32 to vector<32x128xf32>
    %21 = arith.maximumf %19, %20 : vector<32x128xf32>
    %c64_16 = arith.constant 64 : index
    %c0_17 = arith.constant 0 : index
    %22 = vector.load %arg3[%c64_16, %c0_17] : memref<96x32xf32, #tpu.memory_space<vmem>>, vector<32x32xf32>
    %cst_18 = arith.constant dense<0.000000e+00> : vector<32x128xf32>
    %23 = tpu.matmul %22, %21, %cst_18 {dimension_numbers = #tpu.dot_dimension_numbers<[1], [0], [0], [1], [0, 0, 1, 1], [], []>} : vector<32x32xf32>, vector<32x128xf32>, vector<32x128xf32> -> vector<32x128xf32>
    %c96 = arith.constant 96 : index
    %c0_19 = arith.constant 0 : index
    %24 = vector.load %arg4[%c96, %c0_19] : memref<128x1xf32, #tpu.memory_space<vmem>>, vector<32x1xf32>
    %25 = vector.broadcast %24 : vector<32x1xf32> to vector<32x128xf32>
    %26 = arith.addf %23, %25 : vector<32x128xf32>
    %27 = vector.extract_strided_slice %26 {offsets = [0, 0], sizes = [4, 128], strides = [1, 1]} : vector<32x128xf32> to vector<4x128xf32>
    %c0_20 = arith.constant 0 : index
    %c0_21 = arith.constant 0 : index
    %28 = vector.load %arg5[%c0_20, %c0_21] : memref<4x128xf32, #tpu.memory_space<vmem>>, vector<4x128xf32>
    tpu.vector_store %arg5[%c0_20, %c0_21], %27 {strides = array<i32>} : memref<4x128xf32, #tpu.memory_space<vmem>>, vector<4x128xf32>,
    return
  }
  func.func @transform_0(%arg0: i32) -> (i32, i32) {
    %c0_i32 = arith.constant 0 : i32
    %c0_i32_0 = arith.constant 0 : i32
    return %arg0, %c0_i32 : i32, i32
  }
  func.func @transform_1(%arg0: i32) -> (i32, i32) {
    %c0_i32 = arith.constant 0 : i32
    %c0_i32_0 = arith.constant 0 : i32
    %c0_i32_1 = arith.constant 0 : i32
    return %c0_i32, %c0_i32_0 : i32, i32
  }
  func.func @transform_2(%arg0: i32) -> (i32, i32) {
    %c0_i32 = arith.constant 0 : i32
    %c0_i32_0 = arith.constant 0 : i32
    %c0_i32_1 = arith.constant 0 : i32
    return %c0_i32, %c0_i32_0 : i32, i32
  }
  func.func @transform_3(%arg0: i32) -> (i32, i32) {
    %c0_i32 = arith.constant 0 : i32
    %c0_i32_0 = arith.constant 0 : i32
    %c0_i32_1 = arith.constant 0 : i32
    return %c0_i32, %c0_i32_0 : i32, i32
  }
  func.func @transform_4(%arg0: i32) -> (i32, i32) {
    %c0_i32 = arith.constant 0 : i32
    %c0_i32_0 = arith.constant 0 : i32
    return %c0_i32, %arg0 : i32, i32
  }
}

</mosaic_0001>

<bundles_post_ra>
// kernel: dqn_forward.1
= control target key start
LH: loop header
LB: loop body
LE: loop exit
PB: predicated region body
PF: predicated region fallthrough
CT: control target
= control target key end

     0   :  { %9 = vsyncpa [#allocation3], 0  ;;  %s700_s0 = inlined_call_operand.hbm [shape: f32[8,16], index: 0, kind: input, shape index: {}]   ;;  %s701_s1 = inlined_call_operand.hbm [shape: f32[32,16], index: 1, kind: input, shape index: {}]   ;;  %s702_s2 = inlined_call_operand.hbm [shape: f32[96,32], index: 2, kind: input, shape index: {}]   ;;  %s703_s3 = inlined_call_operand.hbm [shape: f32[128,1], index: 3, kind: input, shape index: {}]   ;;  %s704_s4 = inlined_call_operand.hbm [shape: f32[4,8], index: 4, kind: output, shape index: {}]  }
   0x1   :  { %10 = vsyncpa [#allocation6], 0 }
   0x2   :  { %11 = vsyncpa [#allocation9], 0 }
   0x3   :  { %12 = vsyncpa [#allocation4], 0 }
   0x4   :  { %16 = vsyncadd [#allocation3], 1920  ;;  %s30_s17 = sshll.u32 %s701_s1, 4  ;;  %s620_s18 = smov [#allocation5]   ;;  %s31_s17 = int_to_ptr.hbm [resolvable:$true] %s30_s17 }
   0x5   :  { %s32_s19 = sshll.u32 %s620_s18, 4  ;;  %s17_s22 = sshll.u32 %s700_s0, 4  ;;  %s33_s19 = int_to_ptr.vmem [resolvable:$true] %s32_s19  ;;  %s18_s22 = int_to_ptr.hbm [resolvable:$true] %s17_s22 }
   0x6   :  { %s621_s23 = smov 128   ;;  %s622_s24 = smov 8  }
   0x7   :  { %38 = dma.hbm_to_vmem [thread:$0]  %s31_s17, 512, %s33_s19, [#allocation6], %s621_s23, %s621_s23, %s622_s24  }
   0x8   :  { %s623_s25 = smov [#allocation2]   ;;  %s43_s29 = sshll.u32 %s702_s2, 4  ;;  %s44_s29 = int_to_ptr.hbm [resolvable:$true] %s43_s29 }
   0x9   :  { %s19_s26 = sshll.u32 %s623_s25, 4  ;;  %s56_s5 = sshll.u32 %s703_s3, 4  ;;  %s20_s26 = int_to_ptr.vmem [resolvable:$true] %s19_s26  ;;  %s57_s5 = int_to_ptr.hbm [resolvable:$true] %s56_s5 }
   0xa   :  { %25 = dma.hbm_to_vmem [thread:$0]  %s18_s22, 128, %s20_s26, [#allocation3], %s621_s23, %s621_s23, %s622_s24  }
   0xb   :  { %s624_s6 = smov [#allocation7]   ;;  %s625_s0 = smov [#allocation8]  }
   0xc   :  { %s45_s7 = sshll.u32 %s624_s6, 4  ;;  %s58_s8 = sshll.u32 %s625_s0, 4  ;;  %s46_s7 = int_to_ptr.vmem [resolvable:$true] %s45_s7  ;;  %s59_s8 = int_to_ptr.vmem [resolvable:$true] %s58_s8 }
   0xd   :  { %51 = dma.hbm_to_vmem [thread:$0]  %s44_s29, 1536, %s46_s7, [#allocation6], %s621_s23, %s621_s23, %s622_s24  }
   0xe   :  { %64 = dma.hbm_to_vmem [thread:$0]  %s57_s5, 2048, %s59_s8, [#allocation9], %s621_s23, %s621_s23, %s622_s24  }
   0xf   :  { %612 = dma.done.wait [#allocation3], 2048  }
  0x10   :  { %613 = vsyncadd [#allocation3], 4294965248 }
  0x11   :  { %614 = dma.done.wait [#allocation6], 2048  }
  0x12   :  { %615 = vsyncadd [#allocation6], 4294965248 }
  0x13   :  { %616 = dma.done.wait [#allocation9], 2048  }
  0x14   :  { %617 = vsyncadd [#allocation9], 4294965248  ;;  %vm125_vm0 = vcmask 130048   ;;  %v96_v0 = vld [vmem:[#allocation2 + $0x78] sm:$0xff]  ;;  %v95_v1 = vld [vmem:[#allocation2 + $0x70] sm:$0xff]  ;;  %v626_v9 = vmov 0  }
  0x15   :  { %449 = vmatpush.xpose.msk.msra.mxu0 %vm125_vm0, %v96_v0  ;;  %v94_v2 = vld [vmem:[#allocation2 + $0x68] sm:$0xff]  ;;  %v93_v3 = vld [vmem:[#allocation2 + $0x60] sm:$0xff]  ;;  %v92_v4 = vld [vmem:[#allocation2 + $0x58] sm:$0xff]  ;;  %489 = vset.pattern.permute.xlu0 %v626_v9  ;;  %vm247_vm1 = vcmask 261120   ;;  %s627_s2 = smov [#allocation10]   ;;  %s437_s11 = sshll.u32 %s704_s4, 4  ;;  %s438_s11 = int_to_ptr.hbm [resolvable:$true] %s437_s11 }
  0x16   :  { %v91_v5 = vld [vmem:[#allocation2 + $0x50] sm:$0xff]  ;;  %v90_v6 = vld [vmem:[#allocation2 + $0x48] sm:$0xff]  ;;  %v104_v7 = vld [vmem:[#allocation8 + $0x18] sm:$0xff]  ;;  %490 = vset.pattern.permute.xlu1 %v626_v9  ;;  %491 = vset.pattern.permute.xlu2 %v626_v9  ;;  %s435_s3 = sshll.u32 %s627_s2, 4  ;;  %s436_s3 = int_to_ptr.vmem [resolvable:$true] %s435_s3 }
  0x17   :  { %v89_v8 = vld [vmem:[#allocation2 + $0x40] sm:$0xff]  ;;  %122 = vperm.xlu0 %489, %v104_v7   ;;  %v88_v10 = vld [vmem:[#allocation2 + $0x38] sm:$0xff]  ;;  %v102_v11 = vld [vmem:[#allocation8 + $0x8] sm:$0xff] }
  0x18   :  { %v103_v12 = vld [vmem:[#allocation8 + $0x10] sm:$0xff]  ;;  %112 = vperm.xlu1 %490, %v102_v11   ;;  %v86_v14 = vld [vmem:[#allocation2 + $0x28] sm:$0xff]  ;;  %v101_v15 = vld [vmem:[#allocation8] sm:$0xff] }
  0x19   :  { %450 = vmatpush.xpose.msk.msra.mxu0 %vm125_vm0, %v95_v1  ;;  %v87_v13 = vld [vmem:[#allocation2 + $0x30] sm:$0xff]  ;;  %v224_v16 = vld [vmem:[#allocation8 + $0x28] sm:$0xff]  ;;  %v85_v17 = vld [vmem:[#allocation2 + $0x20] sm:$0xff] }
  0x1a   :  { %v84_v18 = vld [vmem:[#allocation2 + $0x18] sm:$0xff]  ;;  %v299_v19 = vld [vmem:[#allocation8 + $0x50] sm:$0xff]  ;;  %v82_v21 = vld [vmem:[#allocation2 + $0x8] sm:$0xff] }
  0x1b   :  { %v83_v20 = vld [vmem:[#allocation2 + $0x10] sm:$0xff]  ;;  %v223_v22 = vld [vmem:[#allocation8 + $0x20] sm:$0xff]  ;;  %v298_v26 = vld [vmem:[#allocation8 + $0x48] sm:$0xff] }
  0x1c   :  { %v370_v23 = vld [vmem:[#allocation8 + $0x60] sm:$0xff]  ;;  %v98_v27 = vld [vmem:[#allocation5 + $0x8] sm:$0xff]  ;;  %v99_v28 = vld [vmem:[#allocation5 + $0x10] sm:$0xff] }
  0x1d   :  { %451 = vmatpush.xpose.msk.msra.mxu0 %vm125_vm0, %v94_v2  ;;  %v81_v24 = vld [vmem:[#allocation2] sm:$0xff]  ;;  %v100_v29 = vld [vmem:[#allocation5 + $0x18] sm:$0xff]  ;;  %v225_v48 = vld [vmem:[#allocation8 + $0x30] sm:$0xff] }
  0x1e   :  { %v97_v25 = vld [vmem:[#allocation5] sm:$0xff]  ;;  %v226_v42 = vld [vmem:[#allocation8 + $0x38] sm:$0xff]  ;;  %v220_v49 = vld [vmem:[#allocation7 + $0x8] sm:$0xff] }
  0x1f   :  { %117 = vperm.xlu0 %489, %v103_v12   ;;  %244 = vperm.xlu2 %491, %v226_v42   ;;  %v219_v47 = vld [vmem:[#allocation7] sm:$0xff]  ;;  %v300_v50 = vld [vmem:[#allocation8 + $0x58] sm:$0xff]  ;;  %v221_v51 = vld [vmem:[#allocation7 + $0x10] sm:$0xff] }
  0x20   :  { %107 = vperm.xlu1 %490, %v101_v15   ;;  %v297_v52 = vld [vmem:[#allocation8 + $0x40] sm:$0xff]  ;;  %v222_v53 = vld [vmem:[#allocation7 + $0x18] sm:$0xff]  ;;  %v294_v7 = vld [vmem:[#allocation7 + $0x28] sm:$0xff] }
  0x21   :  { %452 = vmatpush.xpose.msk.msra.mxu0 %vm125_vm0, %v93_v3  ;;  %v296_v9 = vld [vmem:[#allocation7 + $0x38] sm:$0xff] }
  0x25   :  { %453 = vmatpush.xpose.msk.msra.mxu0 %vm125_vm0, %v92_v4 }
  0x27   :  { %234 = vperm.xlu0 %489, %v224_v16   ;;  %239 = vperm.xlu2 %491, %v225_v48  }
  0x28   :  { %229 = vperm.xlu1 %490, %v223_v22  }
  0x29   :  { %454 = vmatpush.xpose.msk.msra.mxu0 %vm125_vm0, %v91_v5 }
  0x2d   :  { %455 = vmatpush.xpose.msk.msra.mxu0 %vm125_vm0, %v90_v6  ;;  %v293_v6 = vld [vmem:[#allocation7 + $0x20] sm:$0xff] }
  0x2f   :  { %313 = vperm.xlu0 %489, %v299_v19   ;;  %318 = vperm.xlu2 %491, %v300_v50  }
  0x30   :  { %308 = vperm.xlu1 %490, %v298_v26   ;;  %v366_v26 = vld [vmem:[#allocation7 + $0x40] sm:$0xff] }
  0x31   :  { %456 = vmatpush.xpose.msk.msra.mxu0 %vm125_vm0, %v89_v8  ;;  %v295_v8 = vld [vmem:[#allocation7 + $0x30] sm:$0xff] }
  0x35   :  { %457 = vmatpush.xpose.msk.msra.mxu0 %vm125_vm0, %v88_v10 }
  0x37   :  { %376 = vperm.xlu0 %489, %v370_v23   ;;  %303 = vperm.xlu2 %491, %v297_v52  }
  0x39   :  { %458 = vmatpush.xpose.msk.msra.mxu0 %vm125_vm0, %v87_v13 }
  0x3d   :  { %459 = vmatpush.xpose.msk.msra.mxu0 %vm125_vm0, %v86_v14 }
  0x41   :  { %460 = vmatpush.xpose.msk.msra.mxu0 %vm125_vm0, %v85_v17 }
  0x45   :  { %461 = vmatpush.xpose.msk.msra.mxu0 %vm125_vm0, %v84_v18 }
  0x49   :  { %462 = vmatpush.xpose.msk.msra.mxu0 %vm125_vm0, %v83_v20 }
  0x4d   :  { %463 = vmatpush.xpose.msk.msra.mxu0 %vm125_vm0, %v82_v21 }
  0x51   :  { %464 = vmatpush.xpose.msk.msra.mxu0 %vm125_vm0, %v81_v24 }
  0x54   :  { %465 = vmatmul.msk.f32.vlgmr.msra.gmra.mxu0 %vm125_vm0, %v97_v25 }
  0x5c   :  { %466 = vmatmul.msk.f32.gmra.mxu0 %vm125_vm0, %v98_v27  ;;  %v367_v27 = vld [vmem:[#allocation7 + $0x48] sm:$0xff] }
  0x64   :  { %467 = vmatmul.msk.f32.gmra.mxu0 %vm125_vm0, %v99_v28  ;;  %v368_v28 = vld [vmem:[#allocation7 + $0x50] sm:$0xff] }
  0x6c   :  { %468 = vmatmul.msk.f32.gmra.mxu0 %vm125_vm0, %v100_v29  ;;  %v369_v29 = vld [vmem:[#allocation7 + $0x58] sm:$0xff] }
  0x79   :  { %v245_v56 = vpop.permute.xlu2 %244 }
  0x81   :  { %v240_v58 = vpop.permute.xlu2 %239 }
  0x89   :  { %v123_v32 = vpop.permute.xlu0 %122  ;;  %v319_v13 = vpop.permute.xlu2 %318 }
  0x8a   :  { %v113_v33 = vpop.permute.xlu1 %112 }
  0x91   :  { %v118_v35 = vpop.permute.xlu0 %117  ;;  %v304_v21 = vpop.permute.xlu2 %303 }
  0x92   :  { %v108_v39 = vpop.permute.xlu1 %107 }
  0x99   :  { %v235_v62 = vpop.permute.xlu0 %234 }
  0x9a   :  { %v230_v1 = vpop.permute.xlu1 %229 }
  0xa1   :  { %v314_v14 = vpop.permute.xlu0 %313 }
  0xa2   :  { %v309_v18 = vpop.permute.xlu1 %308 }
  0xd1   :  { %v203_v30 = vpop.f32.mrf.mxu0 }
  0xd2   :  { %v204_v43 = vadd.f32 %v203_v30, %v108_v39  ;;  %v377_v30 = vpop.permute.xlu0 %376 }
  0xd4   :  { %v215_v46 = vmax.f32 %v204_v43, 0.0 }
  0xd9   :  { %v206_v31 = vpop.f32.mrf.mxu0 }
  0xda   :  { %v207_v40 = vadd.f32 %v206_v31, %v113_v33 }
  0xdc   :  { %v216_v45 = vmax.f32 %v207_v40, 0.0 }
  0xe1   :  { %v209_v34 = vpop.f32.mrf.mxu0 }
  0xe2   :  { %v210_v37 = vadd.f32 %v209_v34, %v118_v35 }
  0xe4   :  { %v217_v44 = vmax.f32 %v210_v37, 0.0 }
  0xe9   :  { %v212_v36 = vpop.f32.mrf.mxu0 }
  0xea   :  { %v213_v38 = vadd.f32 %v212_v36, %v123_v32 }
  0xec   :  { %v218_v41 = vmax.f32 %v213_v38, 0.0 }
  0xee   :  { %272 = vmatpush.msra.mxu1 %v218_v41 }
  0xf0   :  { %273 = vmatpush.msra.mxu1 %v217_v44 }
  0xf2   :  { %274 = vmatpush.msra.mxu1 %v216_v45 }
  0xf4   :  { %275 = vmatpush.msra.mxu1 %v215_v46 }
  0xf5   :  { %469 = vmatmul.msk.f32.vlgmr.msra.gmra.mxu1 %vm247_vm1, %v219_v47 }
  0xfd   :  { %470 = vmatmul.msk.f32.gmra.mxu1 %vm247_vm1, %v220_v49 }
 0x105   :  { %471 = vmatmul.msk.f32.gmra.mxu1 %vm247_vm1, %v221_v51 }
 0x10d   :  { %472 = vmatmul.msk.f32.gmra.mxu1 %vm247_vm1, %v222_v53 }
 0x172   :  { %v277_v54 = vpop.f32.mrf.mxu1 }
 0x173   :  { %v278_v2 = vadd.f32 %v277_v54, %v230_v1 }
 0x175   :  { %v289_v5 = vmax.f32 %v278_v2, 0.0 }
 0x17a   :  { %v280_v55 = vpop.f32.mrf.mxu1 }
 0x17b   :  { %v281_v63 = vadd.f32 %v280_v55, %v235_v62 }
 0x17d   :  { %v290_v4 = vmax.f32 %v281_v63, 0.0 }
 0x182   :  { %v283_v57 = vpop.f32.mrf.mxu1 }
 0x183   :  { %v284_v60 = vadd.f32 %v283_v57, %v240_v58 }
 0x185   :  { %v291_v3 = vmax.f32 %v284_v60, 0.0 }
 0x18a   :  { %v286_v59 = vpop.f32.mrf.mxu1 }
 0x18b   :  { %v287_v61 = vadd.f32 %v286_v59, %v245_v56 }
 0x18d   :  { %v292_v0 = vmax.f32 %v287_v61, 0.0 }
 0x18f   :  { %345 = vmatpush.msra.mxu2 %v292_v0 }
 0x191   :  { %346 = vmatpush.msra.mxu2 %v291_v3 }
 0x193   :  { %347 = vmatpush.msra.mxu2 %v290_v4 }
 0x195   :  { %348 = vmatpush.msra.mxu2 %v289_v5 }
 0x196   :  { %473 = vmatmul.msk.f32.vlgmr.msra.gmra.mxu2 %vm247_vm1, %v293_v6 }
 0x19e   :  { %474 = vmatmul.msk.f32.gmra.mxu2 %vm247_vm1, %v294_v7 }
 0x1a6   :  { %475 = vmatmul.msk.f32.gmra.mxu2 %vm247_vm1, %v295_v8 }
 0x1ae   :  { %476 = vmatmul.msk.f32.gmra.mxu2 %vm247_vm1, %v296_v9 }
 0x219   :  { %v350_v10 = vpop.f32.mrf.mxu2 }
 0x21a   :  { %v351_v22 = vadd.f32 %v350_v10, %v304_v21 }
 0x21c   :  { %v362_v25 = vmax.f32 %v351_v22, 0.0 }
 0x221   :  { %v353_v11 = vpop.f32.mrf.mxu2 }
 0x222   :  { %v354_v19 = vadd.f32 %v353_v11, %v309_v18 }
 0x224   :  { %v363_v24 = vmax.f32 %v354_v19, 0.0 }
 0x229   :  { %v356_v12 = vpop.f32.mrf.mxu2 }
 0x22a   :  { %v357_v16 = vadd.f32 %v356_v12, %v314_v14 }
 0x22c   :  { %v364_v23 = vmax.f32 %v357_v16, 0.0 }
 0x231   :  { %v359_v15 = vpop.f32.mrf.mxu2 }
 0x232   :  { %v360_v17 = vadd.f32 %v359_v15, %v319_v13 }
 0x234   :  { %v365_v20 = vmax.f32 %v360_v17, 0.0 }
 0x236   :  { %415 = vmatpush.msra.mxu3 %v365_v20 }
 0x238   :  { %416 = vmatpush.msra.mxu3 %v364_v23 }
 0x23a   :  { %417 = vmatpush.msra.mxu3 %v363_v24 }
 0x23c   :  { %418 = vmatpush.msra.mxu3 %v362_v25 }
 0x23d   :  { %477 = vmatmul.msk.f32.vlgmr.msra.gmra.mxu3 %vm247_vm1, %v366_v26 }
 0x245   :  { %478 = vmatmul.msk.f32.gmra.mxu3 %vm247_vm1, %v367_v27 }
 0x24d   :  { %479 = vmatmul.msk.f32.gmra.mxu3 %vm247_vm1, %v368_v28 }
 0x255   :  { %480 = vmatmul.msk.f32.gmra.mxu3 %vm247_vm1, %v369_v29 }
 0x2c0   :  { %v420_v31 = vpop.f32.mrf.mxu3 }
 0x2c1   :  { %v421_v32 = vadd.f32 %v420_v31, %v377_v30 }
 0x2c3   :  { %429 = vst [vmem:[#allocation10] sm:$0xf] %v421_v32 }
 0x2c4   :  { %440 = dma.vmem_to_hbm [thread:$0]  %s436_s3, 64, %s438_s11, [#allocation4]  }
 0x2c8   :  { %v423_v33 = vpop.f32.mrf.mxu3 }
 0x2d0   :  { %v425_v34 = vpop.f32.mrf.mxu3 }
 0x2d8   :  { %v427_v35 = vpop.f32.mrf.mxu3 }
 0x2d9   :  { %618 = dma.done.wait [#allocation4], 64  }
 0x2da   :  { %619 = vsyncadd [#allocation4], 4294967232 }
 0x2db   :  { %445 = vsyncpa [#allocation3], 1 }
 0x2dc   :  { %446 = vsyncpa [#allocation6], 1 }
 0x2dd   :  { %447 = vsyncpa [#allocation9], 1 }
 0x2de   :  { %448 = vsyncpa [#allocation4], 1 }

</bundles_post_ra>
